<compile_context>
chip_gen: v5e
topology: v5e:2x2
jax: 0.10.0
libtpu: 0.0.40
codegen_flags: <defaults>
</compile_context>

<pallas_src>
import functools
import math

import jax
import jax.numpy as jnp
from jax.experimental import pallas as pl
from jax.experimental.pallas import tpu as pltpu

LANE = 128


def _round_up(v, m):
    return (v + m - 1) // m * m


def _default_gate_dtype():
    """bf16 gate math on v6e/v7x (bf16 VPU/EUP); f32 elsewhere (v5e has no bf16 VPU/EUP)."""
    try:
        kind = jax.devices()[0].device_kind.lower()
    except Exception:
        return jnp.float32
    if ("v6" in kind) or ("v7" in kind) or ("7x" in kind):
        return jnp.bfloat16
    return jnp.float32


def _highway_stack_kernel(x_ref, w_ref, b_ref, o_ref, *, wp, gate_dtype, resident):
    l = pl.program_id(1)

    # o_ref's block index depends only on the row-tile axis, so it stays
    # resident in VMEM across the whole layer axis: it *is* the accumulator.
    @pl.when(l == 0)
    def _():
        o_ref[...] = x_ref[...]

    x = o_ref[...]                                              # (TM, Wp) f32
    wl = w_ref[l] if resident else w_ref[0]                     # (Wp, 4*Wp)
    bl = b_ref[l] if resident else b_ref[0]                     # (1, 4*Wp) f32

    # One fused MXU call per layer: columns = [highway s | i | g | o]
    # (forget gate removed, gate_bias folded, 0.5 sigmoid pre-scale folded).
    z = jnp.dot(x.astype(wl.dtype), wl, preferred_element_type=jnp.float32) + bl

    # sigmoid(u) == 0.5*tanh(0.5*u)+0.5; the 0.5*u is already baked into the
    # s/i/o columns, so ONE tanh over the whole 4*Wp block covers all gates.
    t = jnp.tanh(z.astype(gate_dtype))                          # (TM, 4*Wp)
    i_g = 0.5 * t[:, 1 * wp:2 * wp] + 0.5                       # sigmoid(i)
    g_g = t[:, 2 * wp:3 * wp]                                   # tanh(g)
    o_g = 0.5 * t[:, 3 * wp:4 * wp] + 0.5                       # sigmoid(o)
    h = (o_g * jnp.tanh(i_g * g_g)).astype(jnp.float32)         # LSTMCell h, h0 = c0 = 0

    # s*h + (1-s)*x  with  s = 0.5*ts + 0.5   ==   0.5*((h + x) + ts*(h - x))
    ts = t[:, 0 * wp:1 * wp].astype(jnp.float32)
    o_ref[...] = 0.5 * ((h + x) + ts * (h - x))


def highway_lstm_forward(x, w_stack, b_stack, *, tm=None, gate_dtype=None):
    """x: (seq, batch, width); w_stack: (L, Wp, 4*Wp); b_stack: (L, 1, 4*Wp) f32."""
    seq, batch, width = x.shape
    num_layers, wp, four_wp = w_stack.shape
    assert four_wp == 4 * wp
    n = seq * batch

    if gate_dtype is None:
        gate_dtype = _default_gate_dtype()

    # Row tile: big enough to amortize per-step overhead, small enough for
    # the v7x 64 MiB VMEM budget, and clamped so small inputs still produce
    # at least two row tiles (v7x has 2 TensorCores on the "parallel" axis).
    if tm is None:
        tm = 1024 if wp <= 256 else (512 if wp <= 512 else 256)
    tm = min(tm, max(8, _round_up(n, 16) // 2))
    n_pad = _round_up(n, tm)

    xf = x.reshape(n, width).astype(jnp.float32)
    if n_pad == n and width == wp:
        xp = xf                                  # already lane/tile aligned: no pad round-trip
    else:
        xp = jnp.zeros((n_pad, wp), jnp.float32).at[:n, :width].set(xf)

    # Weight/bias residency: constant index_map -> DMA'd from HBM exactly once.
    per_layer_wb = wp * 4 * wp * w_stack.dtype.itemsize + 4 * wp * b_stack.dtype.itemsize
    resident = num_layers * per_layer_wb <= 16 * 1024 * 1024
    if resident:
        w_spec = pl.BlockSpec((num_layers, wp, 4 * wp), lambda i, l: (0, 0, 0))
        b_spec = pl.BlockSpec((num_layers, 1, 4 * wp), lambda i, l: (0, 0, 0))
    else:
        w_spec = pl.BlockSpec((1, wp, 4 * wp), lambda i, l: (l, 0, 0))
        b_spec = pl.BlockSpec((1, 1, 4 * wp), lambda i, l: (l, 0, 0))

    # VMEM budget: (double-buffered) x + out tiles, weight/bias stack, z/tanh temps.
    wb_vmem = 2 * (num_layers if resident else 1) * per_layer_wb
    io_vmem = 2 * 2 * tm * wp * 4
    tmp_vmem = 3 * tm * 4 * wp * 4
    vmem_limit = int(min(56 * 1024 * 1024,
                         max(32 * 1024 * 1024, 2 * (wb_vmem + io_vmem + tmp_vmem))))

    kernel = functools.partial(_highway_stack_kernel, wp=wp,
                               gate_dtype=gate_dtype, resident=resident)
    out = pl.pallas_call(
        kernel,
        out_shape=jax.ShapeDtypeStruct((n_pad, wp), jnp.float32),
        grid=(n_pad // tm, num_layers),
        in_specs=[
            pl.BlockSpec((tm, wp), lambda i, l: (i, 0)),   # activation row tile (one fetch per i)
            w_spec,                                        # fused weight stack (resident)
            b_spec,                                        # fused bias stack (resident)
        ],
        out_specs=pl.BlockSpec((tm, wp), lambda i, l: (i, 0)),
        input_output_aliases={0: 0},                       # output reuses the padded buffer
        compiler_params=pltpu.CompilerParams(
            dimension_semantics=("parallel", "arbitrary"),
            vmem_limit_bytes=vmem_limit,
        ),
    )(xp, w_stack, b_stack)
    return out[:n, :width].reshape(seq, batch, width).astype(x.dtype)


def init_raw_params(key, num_layers, width):
    """Deterministic init mirroring nn.Linear / nn.LSTMCell shapes (uniform +-1/sqrt(width))."""
    bound = 1.0 / math.sqrt(width)
    params = []
    for _ in range(num_layers):
        key, k1, k2, k3, k4, k5, k6 = jax.random.split(key, 7)
        params.append(dict(
            wg=jax.random.uniform(k1, (width, width), jnp.float32, -bound, bound),
            bg=jax.random.uniform(k2, (width,), jnp.float32, -bound, bound),
            w_ih=jax.random.uniform(k3, (4 * width, width), jnp.float32, -bound, bound),
            w_hh=jax.random.uniform(k4, (4 * width, width), jnp.float32, -bound, bound),  # unused: h0 == 0
            b_ih=jax.random.uniform(k5, (4 * width,), jnp.float32, -bound, bound),
            b_hh=jax.random.uniform(k6, (4 * width,), jnp.float32, -bound, bound),
        ))
    return params


def fuse_params(raw, width, gate_bias, *, weight_dtype=jnp.bfloat16):
    """Lane-padded fused weight/bias stacks: columns [s-gate | i | g | o].

    Forget-gate rows are dropped (c0 == 0), gate_bias is folded into the bias,
    and the 0.5 pre-scale of sigmoid(u)=0.5*tanh(0.5*u)+0.5 is folded into the
    s/i/o columns (exact under bf16: multiply by a power of two).
    """
    wp = _round_up(max(width, LANE), LANE)
    W = width
    w_blocks, b_blocks = [], []
    for p in raw:
        wi = p["w_ih"][0 * W:1 * W]        # input-gate rows
        wg_cell = p["w_ih"][2 * W:3 * W]   # cell-candidate rows
        wo = p["w_ih"][3 * W:4 * W]        # output-gate rows (forget rows dropped)
        bi = p["b_ih"][0 * W:1 * W] + p["b_hh"][0 * W:1 * W]
        bg_cell = p["b_ih"][2 * W:3 * W] + p["b_hh"][2 * W:3 * W]
        bo = p["b_ih"][3 * W:4 * W] + p["b_hh"][3 * W:4 * W]

        wc = jnp.zeros((wp, 4 * wp), jnp.float32)
        wc = wc.at[:W, 0 * wp:0 * wp + W].set(0.5 * p["wg"].T)
        wc = wc.at[:W, 1 * wp:1 * wp + W].set(0.5 * wi.T)
        wc = wc.at[:W, 2 * wp:2 * wp + W].set(wg_cell.T)
        wc = wc.at[:W, 3 * wp:3 * wp + W].set(0.5 * wo.T)

        bb = jnp.zeros((1, 4 * wp), jnp.float32)
        bb = bb.at[0, 0 * wp:0 * wp + W].set(0.5 * (p["bg"] + gate_bias))   # fold highway bias
        bb = bb.at[0, 1 * wp:1 * wp + W].set(0.5 * bi)
        bb = bb.at[0, 2 * wp:2 * wp + W].set(bg_cell)
        bb = bb.at[0, 3 * wp:3 * wp + W].set(0.5 * bo)

        w_blocks.append(wc)
        b_blocks.append(bb)
    w_stack = jnp.stack(w_blocks).astype(weight_dtype)   # bf16 weights, f32 MXU accumulation
    b_stack = jnp.stack(b_blocks)                        # f32 bias, added post-accumulation
    return w_stack, b_stack


def reference_fused(x, w_stack, b_stack, width, gate_dtype):
    """Pure-JAX replay of the kernel math (same fused weights, folded scales, gate dtype)."""
    seq, batch, _ = x.shape
    num_layers, wp, _ = w_stack.shape
    n = seq * batch
    r = jnp.zeros((n, wp), jnp.float32).at[:, :width].set(
        x.reshape(n, width).astype(jnp.float32))
    for l in range(num_layers):
        z = jnp.dot(r.astype(w_stack.dtype), w_stack[l],
                    preferred_element_type=jnp.float32) + b_stack[l]
        t = jnp.tanh(z.astype(gate_dtype))
        i_g = 0.5 * t[:, 1 * wp:2 * wp] + 0.5
        g_g = t[:, 2 * wp:3 * wp]
        o_g = 0.5 * t[:, 3 * wp:4 * wp] + 0.5
        h = (o_g * jnp.tanh(i_g * g_g)).astype(jnp.float32)
        ts = t[:, 0 * wp:1 * wp].astype(jnp.float32)
        r = 0.5 * ((h + r) + ts * (h - r))
    return r[:, :width].reshape(seq, batch, width)


def reference_module(x, raw, gate_bias):
    """Pure-f32 re-implementation of the PyTorch module's forward (eval mode)."""
    seq, batch, width = x.shape
    r = x.reshape(seq * batch, width)
    for p in raw:
        gate = r @ p["wg"].T + p["bg"]
        gates = r @ p["w_ih"].T + (p["b_ih"] + p["b_hh"])
        i_g = jax.nn.sigmoid(gates[:, :width])
        g_g = jnp.tanh(gates[:, 2 * width:3 * width])
        o_g = jax.nn.sigmoid(gates[:, 3 * width:])
        h = o_g * jnp.tanh(i_g * g_g)
        s = jax.nn.sigmoid(gate + gate_bias)
        r = s * h + (1 - s) * r
    return r.reshape(seq, batch, width)


if __name__ == "__main__":
    num_layers = 2
    width = 32
    gate_bias = 1.0          # the module's `bias` scalar added to the highway gate
    seq, batch = 8, 2

    key = jax.random.PRNGKey(0)
    key, xk, pk = jax.random.split(key, 3)
    x = jax.random.normal(xk, (seq, batch, width), jnp.float32)

    raw = init_raw_params(pk, num_layers, width)
    # TODO(synk): nn.Dropout train-mode masking not implemented; eval-mode identity is used.
    w_stack, b_stack = fuse_params(raw, width, gate_bias, weight_dtype=jnp.bfloat16)

    gate_dtype = _default_gate_dtype()
    fwd = jax.jit(functools.partial(highway_lstm_forward, gate_dtype=gate_dtype))
    out = jax.block_until_ready(fwd(x, w_stack, b_stack))
    assert out.shape == (seq, batch, width)

    # Same-precision parity check (replays the fused / folded-scale math).
    ref_f = reference_fused(x, w_stack, b_stack, width, gate_dtype)
    tol_f = 2e-2 if gate_dtype == jnp.bfloat16 else 2e-3
    assert jnp.allclose(out, ref_f, atol=tol_f, rtol=tol_f), "mismatch vs fused reference"

    # Semantics check against the f32 module math (looser tol: bf16 weights/gates).
    ref_m = reference_module(x, raw, gate_bias)
    tol_m = 7e-2 if gate_dtype == jnp.bfloat16 else 5e-2
    assert jnp.allclose(out, ref_m, atol=tol_m, rtol=tol_m), "mismatch vs f32 module reference"

    print("KERNEL_OK")
</pallas_src>

<mosaic_0001>
module attributes {stable_mosaic.version = 11 : i64} {
  func.func @_highway_stack_kernel(%arg0: i32, %arg1: i32, %arg2: memref<8x128xf32, #tpu.memory_space<vmem>>, %arg3: memref<2x128x512xbf16, #tpu.memory_space<vmem>>, %arg4: memref<2x1x512xf32, #tpu.memory_space<vmem>>, %arg5: memref<8x128xf32, #tpu.memory_space<vmem>>) attributes {dimension_semantics = [#tpu.dimension_semantics<parallel>, #tpu.dimension_semantics<arbitrary>], iteration_bounds = array<i64: 2, 2>, scalar_prefetch = 0 : i64, scratch_operands = 0 : i64, tpu.core_type = #tpu.core_type<tc>, window_params = [{transform_indices = @transform_0, window_bounds = array<i64: 8, 128>}, {pipeline_mode = #tpu.pipeline_mode<synchronous>, transform_indices = @transform_1, window_bounds = array<i64: 2, 128, 512>}, {pipeline_mode = #tpu.pipeline_mode<synchronous>, transform_indices = @transform_2, window_bounds = array<i64: 2, 1, 512>}, {transform_indices = @transform_3, window_bounds = array<i64: 8, 128>}]} {
    %c0_i32 = arith.constant 0 : i32
    %0 = arith.cmpi eq, %arg1, %c0_i32 : i32
    %1 = arith.extui %0 : i1 to i32
    %c0_i32_0 = arith.constant 0 : i32
    %2 = arith.cmpi ne, %1, %c0_i32_0 : i32
    scf.if %2 {
      %c0_13 = arith.constant 0 : index
      %c0_14 = arith.constant 0 : index
      %37 = vector.load %arg2[%c0_13, %c0_14] : memref<8x128xf32, #tpu.memory_space<vmem>>, vector<8x128xf32>
      %c0_15 = arith.constant 0 : index
      %c0_16 = arith.constant 0 : index
      %38 = vector.load %arg5[%c0_15, %c0_16] : memref<8x128xf32, #tpu.memory_space<vmem>>, vector<8x128xf32>
      tpu.vector_store %arg5[%c0_15, %c0_16], %37 {strides = array<i32>} : memref<8x128xf32, #tpu.memory_space<vmem>>, vector<8x128xf32>,
    } else {
    }
    %c0 = arith.constant 0 : index
    %c0_1 = arith.constant 0 : index
    %3 = vector.load %arg5[%c0, %c0_1] : memref<8x128xf32, #tpu.memory_space<vmem>>, vector<8x128xf32>
    %4 = arith.index_cast %arg1 : i32 to index
    %c0_2 = arith.constant 0 : index
    %c0_3 = arith.constant 0 : index
    %5 = vector.load %arg3[%4, %c0_2, %c0_3] : memref<2x128x512xbf16, #tpu.memory_space<vmem>>, vector<1x128x512xbf16>
    %6 = vector.shape_cast %5 : vector<1x128x512xbf16> to vector<128x512xbf16>
    %7 = arith.index_cast %arg1 : i32 to index
    %c0_4 = arith.constant 0 : index
    %c0_5 = arith.constant 0 : index
    %8 = vector.load %arg4[%7, %c0_4, %c0_5] : memref<2x1x512xf32, #tpu.memory_space<vmem>>, vector<1x1x512xf32>
    %9 = vector.shape_cast %8 : vector<1x1x512xf32> to vector<1x512xf32>
    %10 = arith.truncf %3 : vector<8x128xf32> to vector<8x128xbf16>
    %cst = arith.constant dense<0.000000e+00> : vector<8x512xf32>
    %11 = tpu.matmul %10, %6, %cst {dimension_numbers = #tpu.dot_dimension_numbers<[1], [0], [0], [1], [0, 0, 1, 1], [], []>} : vector<8x128xbf16>, vector<128x512xbf16>, vector<8x512xf32> -> vector<8x512xf32>
    %12 = vector.broadcast %9 : vector<1x512xf32> to vector<8x512xf32>
    %13 = arith.addf %11, %12 : vector<8x512xf32>
    %14 = math.tanh %13 : vector<8x512xf32>
    %15 = vector.extract_strided_slice %14 {offsets = [0, 128], sizes = [8, 128], strides = [1, 1]} : vector<8x512xf32> to vector<8x128xf32>
    %cst_6 = arith.constant 5.000000e-01 : f32
    %16 = vector.broadcast %cst_6 : f32 to vector<8x128xf32>
    %17 = arith.mulf %16, %15 : vector<8x128xf32>
    %cst_7 = arith.constant 5.000000e-01 : f32
    %18 = vector.broadcast %cst_7 : f32 to vector<8x128xf32>
    %19 = arith.addf %17, %18 : vector<8x128xf32>
    %20 = vector.extract_strided_slice %14 {offsets = [0, 256], sizes = [8, 128], strides = [1, 1]} : vector<8x512xf32> to vector<8x128xf32>
    %21 = vector.extract_strided_slice %14 {offsets = [0, 384], sizes = [8, 128], strides = [1, 1]} : vector<8x512xf32> to vector<8x128xf32>
    %cst_8 = arith.constant 5.000000e-01 : f32
    %22 = vector.broadcast %cst_8 : f32 to vector<8x128xf32>
    %23 = arith.mulf %22, %21 : vector<8x128xf32>
    %cst_9 = arith.constant 5.000000e-01 : f32
    %24 = vector.broadcast %cst_9 : f32 to vector<8x128xf32>
    %25 = arith.addf %23, %24 : vector<8x128xf32>
    %26 = arith.mulf %19, %20 : vector<8x128xf32>
    %27 = math.tanh %26 : vector<8x128xf32>
    %28 = arith.mulf %25, %27 : vector<8x128xf32>
    %29 = vector.extract_strided_slice %14 {offsets = [0, 0], sizes = [8, 128], strides = [1, 1]} : vector<8x512xf32> to vector<8x128xf32>
    %30 = arith.addf %28, %3 : vector<8x128xf32>
    %31 = arith.subf %28, %3 : vector<8x128xf32>
    %32 = arith.mulf %29, %31 : vector<8x128xf32>
    %33 = arith.addf %30, %32 : vector<8x128xf32>
    %cst_10 = arith.constant 5.000000e-01 : f32
    %34 = vector.broadcast %cst_10 : f32 to vector<8x128xf32>
    %35 = arith.mulf %34, %33 : vector<8x128xf32>
    %c0_11 = arith.constant 0 : index
    %c0_12 = arith.constant 0 : index
    %36 = vector.load %arg5[%c0_11, %c0_12] : memref<8x128xf32, #tpu.memory_space<vmem>>, vector<8x128xf32>
    tpu.vector_store %arg5[%c0_11, %c0_12], %35 {strides = array<i32>} : memref<8x128xf32, #tpu.memory_space<vmem>>, vector<8x128xf32>,
    return
  }
  func.func @transform_0(%arg0: i32, %arg1: i32) -> (i32, i32) {
    %c0_i32 = arith.constant 0 : i32
    %c0_i32_0 = arith.constant 0 : i32
    return %arg0, %c0_i32 : i32, i32
  }
  func.func @transform_1(%arg0: i32, %arg1: i32) -> (i32, i32, i32) {
    %c0_i32 = arith.constant 0 : i32
    %c0_i32_0 = arith.constant 0 : i32
    %c0_i32_1 = arith.constant 0 : i32
    %c0_i32_2 = arith.constant 0 : i32
    return %c0_i32, %c0_i32_0, %c0_i32_1 : i32, i32, i32
  }
  func.func @transform_2(%arg0: i32, %arg1: i32) -> (i32, i32, i32) {
    %c0_i32 = arith.constant 0 : i32
    %c0_i32_0 = arith.constant 0 : i32
    %c0_i32_1 = arith.constant 0 : i32
    %c0_i32_2 = arith.constant 0 : i32
    return %c0_i32, %c0_i32_0, %c0_i32_1 : i32, i32, i32
  }
  func.func @transform_3(%arg0: i32, %arg1: i32) -> (i32, i32) {
    %c0_i32 = arith.constant 0 : i32
    %c0_i32_0 = arith.constant 0 : i32
    return %arg0, %c0_i32 : i32, i32
  }
}

</mosaic_0001>

<bundles_post_ra>
// kernel: highway_lstm_forward.1
= control target key start
LH: loop header
LB: loop body
LE: loop exit
PB: predicated region body
PF: predicated region fallthrough
CT: control target
= control target key end

     0   :  { %8 = vsyncpa [#allocation3], 0  ;;  %s896_s12 = smov 0   ;;  %s898_s13 = smov 0   ;;  %s1052_s0 = inlined_call_operand.vmem [shape: f32[16,128], index: 0, kind: input, shape index: {}, may-alias: {0,3}]   ;;  %s1053_s1 = inlined_call_operand.hbm [shape: bf16[2,128,512], index: 1, kind: input, shape index: {}]   ;;  %s1054_s2 = inlined_call_operand.vmem [shape: f32[2,1,512], index: 2, kind: input, shape index: {}]   ;;  %s1055_s3 = inlined_call_operand.vmem [shape: f32[16,128], index: 3, kind: output, shape index: {}, may-alias: {0,3}]  }
   0x1   :  { %s900_s14 = smov 0   ;;  %s902_s15 = smov 0  }
   0x2   :  { %s904_s16 = smov 0  }
   0x3 LB: > { %s560_s17 = sadd.s32 4294967295, %s871_s16   ;;  %s23_s18 = sadd.s32 1, %s863_s14  ;;  %s871_s16 = sphi %s904_s16, %s14_s16   ;;  %s867_s15 = sphi %s902_s15, %s1061_s15   ;;  %s863_s14 = sphi %s900_s14, %s1060_s14   ;;  %s859_s13 = sphi %s898_s13, %s1059_s13   ;;  %s855_s12 = sphi %s896_s12, %s1058_s12  }
   0x4   : > { %p24_p0 = scmp.ge.s32.totalorder %s23_s18, 2  ;;  %s26_s19 = sadd.s32 1, %s867_s15 }
   0x5   : > { %p562_p1 = scmp.ge.s32.totalorder %s871_s16, 1  ;;  %p125_p2 = scmp.lt.s32.totalorder %s871_s16, 5 }
   0x6   : > { %s1063_s18 = smov (%p24_p0, %s23_s18), 0  ;;  %s1065_s19 = smov (!%p24_p0, %s26_s19), %s867_s15 }
   0x7   : > { %p929_p3 = pnand %p562_p1, %p125_p2  ;;  %p28_p4 = scmp.ge.s32.totalorder %s1065_s19, 2 }
   0x8   : > { %p933_p5 = scmp.eq.s32.totalorder %s560_s17, 0  ;;  %s136_s24 = sshll.u32 %s1053_s1, 4  ;;  %s137_s24 = int_to_ptr.hbm [resolvable:$true] %s136_s24 }
   0x9   : > { %p740_p6 = pneg %p929_p3  ;;  %s1067_s19 = smov (%p28_p4, %s1065_s19), 0 }
   0xa   : > { %s873_s25 = smov [#allocation2]   ;;  %s874_s27 = smov 256  }
   0xb   : > { %s138_s26 = sshll.u32 %s873_s25, 4  ;;  %p741_p7 = pnand %p933_p5, %p740_p6  ;;  %s139_s26 = int_to_ptr.vmem [resolvable:$true] %s138_s26 }
   0xc   : > { %s875_s28 = smov 16   ;;  %164 = sbr.rel (%p929_p3) target bundleno = 225 (0xe1), region = 32 }
   0xd   : > { %743 = dma.hbm_to_vmem [thread:$0]  (!%p741_p7), %s137_s24, 8192, %s139_s26, [#allocation3], %s874_s27, %s874_s27, %s875_s28  }
  0x11   : > { %850 = dma.done.wait (%p933_p5), [#allocation3], 8192  }
  0x12   : > { %852 = vsyncadd (%p933_p5), [#allocation3], 4294959104  ;;  %p187_p8 = scmp.lt.s32.totalorder %s859_s13, 1  ;;  %p569_p9 = scmp.ne.s32.totalorder %s855_s12, 0 }
  0x14   : > { %s1069_s13 = smov (!%p187_p8, %s859_s13), 1  ;;  %198 = sbr.rel (%p569_p9) target bundleno = 27 (0x1b), region = 40 }
  0x15   : > { %s567_s29 = sshll.u32 %s1069_s13, 3 }
  0x16   : > { %s190_s5 = scalar_lea.vmem %s1052_s0, %s567_s29  ;;  %s960_s8 = scalar_lea.vmem %s1055_s3, %s567_s29 }
  0x19   : > { %v199_v0 = vld [vmem:[%s190_s5] sm:$0xff] }
  0x1a   : > { %200 = vst [vmem:[%s960_s8] sm:$0xff] %v199_v0 }
  0x1b PF: > { %s703_s9 = sshll.u32 %s855_s12, 8  ;;  %s572_s11 = sshll.u32 %s855_s12, 2 }
  0x1c   : > { %s965_s10 = scalar_lea.vmem [#allocation2], %s703_s9  ;;  %s238_s20 = scalar_lea.vmem %s1054_s2, %s572_s11 }
  0x1d   : > { %v732_v1 = vld [vmem:[%s965_s10 + $0xe4] sm:$0xf]  ;;  %v689_v2 = vld [vmem:[%s965_s10 + $0xf0] sm:$0xf0]  ;;  %v695_v3 = vld [vmem:[%s965_s10 + $0xe8] sm:$0xf] }
  0x1e   : > { %v692_v4 = vor.u32 %v732_v1, %v689_v2  ;;  %v735_v5 = vld [vmem:[%s965_s10 + $0xf4] sm:$0xf0]  ;;  %v733_v6 = vld [vmem:[%s965_s10 + $0xec] sm:$0xf]  ;;  %v697_v7 = vld [vmem:[%s965_s10 + $0xf8] sm:$0xf0] }
  0x1f   : > { %v696_v8 = vor.u32 %v735_v5, %v695_v3  ;;  %v700_v9 = vor.u32 %v733_v6, %v697_v7  ;;  %v728_v10 = vld [vmem:[%s965_s10 + $0xc4] sm:$0xf]  ;;  %v673_v11 = vld [vmem:[%s965_s10 + $0xd0] sm:$0xf0]  ;;  %v679_v12 = vld [vmem:[%s965_s10 + $0xc8] sm:$0xf] }
  0x20   : > { %423 = vmatpush.bf16.msra.mxu1 %v692_v4  ;;  %v676_v13 = vor.u32 %v728_v10, %v673_v11  ;;  %v731_v14 = vld [vmem:[%s965_s10 + $0xd4] sm:$0xf0]  ;;  %v729_v15 = vld [vmem:[%s965_s10 + $0xcc] sm:$0xf]  ;;  %v681_v16 = vld [vmem:[%s965_s10 + $0xd8] sm:$0xf0] }
  0x21   : > { %436 = vmatpush.bf16.msra.mxu2 %v696_v8  ;;  %449 = vmatpush.bf16.msra.mxu3 %v700_v9  ;;  %v680_v17 = vor.u32 %v731_v14, %v679_v12  ;;  %v684_v18 = vor.u32 %v729_v15, %v681_v16  ;;  %v724_v19 = vld [vmem:[%s965_s10 + $0xa4] sm:$0xf]  ;;  %v657_v20 = vld [vmem:[%s965_s10 + $0xb0] sm:$0xf0]  ;;  %v663_v21 = vld [vmem:[%s965_s10 + $0xa8] sm:$0xf] }
  0x22   : > { %v727_v22 = vld [vmem:[%s965_s10 + $0xb4] sm:$0xf0]  ;;  %v725_v23 = vld [vmem:[%s965_s10 + $0xac] sm:$0xf]  ;;  %v665_v24 = vld [vmem:[%s965_s10 + $0xb8] sm:$0xf0]  ;;  %v660_v27 = vor.u32 %v724_v19, %v657_v20 }
  0x23   : > { %v687_v25 = vld [vmem:[%s965_s10 + $0xe0] sm:$0xf]  ;;  %v734_v26 = vld [vmem:[%s965_s10 + $0xec] sm:$0xf0]  ;;  %v720_v29 = vld [vmem:[%s965_s10 + $0x84] sm:$0xf]  ;;  %v664_v31 = vor.u32 %v727_v22, %v663_v21  ;;  %v668_v32 = vor.u32 %v725_v23, %v665_v24 }
  0x24   : > { %424 = vmatpush.bf16.msra.mxu1 %v676_v13  ;;  %v688_v28 = vor.u32 %v734_v26, %v687_v25  ;;  %v641_v30 = vld [vmem:[%s965_s10 + $0x90] sm:$0xf0]  ;;  %v647_v33 = vld [vmem:[%s965_s10 + $0x88] sm:$0xf]  ;;  %v723_v34 = vld [vmem:[%s965_s10 + $0x94] sm:$0xf0] }
  0x25   : > { %437 = vmatpush.bf16.msra.mxu2 %v680_v17  ;;  %450 = vmatpush.bf16.msra.mxu3 %v684_v18  ;;  %v671_v35 = vld [vmem:[%s965_s10 + $0xc0] sm:$0xf]  ;;  %v721_v36 = vld [vmem:[%s965_s10 + $0x8c] sm:$0xf]  ;;  %v649_v37 = vld [vmem:[%s965_s10 + $0x98] sm:$0xf0]  ;;  %v644_v40 = vor.u32 %v720_v29, %v641_v30  ;;  %v648_v43 = vor.u32 %v723_v34, %v647_v33 }
  0x26   : > { %410 = vmatpush.bf16.msra.mxu0 %v688_v28  ;;  %v730_v38 = vld [vmem:[%s965_s10 + $0xcc] sm:$0xf0]  ;;  %v655_v41 = vld [vmem:[%s965_s10 + $0xa0] sm:$0xf]  ;;  %v652_v44 = vor.u32 %v721_v36, %v649_v37  ;;  %v716_v45 = vld [vmem:[%s965_s10 + $0x64] sm:$0xf] }
  0x27   : > { %v672_v39 = vor.u32 %v730_v38, %v671_v35  ;;  %v726_v42 = vld [vmem:[%s965_s10 + $0xac] sm:$0xf0]  ;;  %v625_v46 = vld [vmem:[%s965_s10 + $0x70] sm:$0xf0]  ;;  %v631_v47 = vld [vmem:[%s965_s10 + $0x68] sm:$0xf] }
  0x28   : > { %425 = vmatpush.bf16.msra.mxu1 %v660_v27  ;;  %v719_v48 = vld [vmem:[%s965_s10 + $0x74] sm:$0xf0]  ;;  %v717_v49 = vld [vmem:[%s965_s10 + $0x6c] sm:$0xf]  ;;  %v633_v50 = vld [vmem:[%s965_s10 + $0x78] sm:$0xf0]  ;;  %v656_v51 = vor.u32 %v726_v42, %v655_v41  ;;  %v628_v54 = vor.u32 %v716_v45, %v625_v46 }
  0x29   : > { %438 = vmatpush.bf16.msra.mxu2 %v664_v31  ;;  %451 = vmatpush.bf16.msra.mxu3 %v668_v32  ;;  %v639_v52 = vld [vmem:[%s965_s10 + $0x80] sm:$0xf]  ;;  %v722_v53 = vld [vmem:[%s965_s10 + $0x8c] sm:$0xf0]  ;;  %v632_v55 = vor.u32 %v719_v48, %v631_v47  ;;  %v636_v56 = vor.u32 %v717_v49, %v633_v50  ;;  %v712_v57 = vld [vmem:[%s965_s10 + $0x44] sm:$0xf] }
  0x2a   : > { %411 = vmatpush.bf16.msra.mxu0 %v672_v39  ;;  %v609_v58 = vld [vmem:[%s965_s10 + $0x50] sm:$0xf0]  ;;  %v615_v59 = vld [vmem:[%s965_s10 + $0x48] sm:$0xf]  ;;  %v715_v60 = vld [vmem:[%s965_s10 + $0x54] sm:$0xf0]  ;;  %v640_v63 = vor.u32 %v722_v53, %v639_v52 }
  0x2b   : > { %v713_v61 = vld [vmem:[%s965_s10 + $0x4c] sm:$0xf]  ;;  %v617_v62 = vld [vmem:[%s965_s10 + $0x58] sm:$0xf0]  ;;  %v623_v0 = vld [vmem:[%s965_s10 + $0x60] sm:$0xf]  ;;  %v612_v2 = vor.u32 %v712_v57, %v609_v58  ;;  %v616_v3 = vor.u32 %v715_v60, %v615_v59 }
  0x2c   : > { %426 = vmatpush.bf16.msra.mxu1 %v644_v40  ;;  %v718_v1 = vld [vmem:[%s965_s10 + $0x6c] sm:$0xf0]  ;;  %v620_v4 = vor.u32 %v713_v61, %v617_v62  ;;  %v708_v5 = vld [vmem:[%s965_s10 + $0x24] sm:$0xf]  ;;  %v593_v6 = vld [vmem:[%s965_s10 + $0x30] sm:$0xf0] }
  0x2d   : > { %439 = vmatpush.bf16.msra.mxu2 %v648_v43  ;;  %452 = vmatpush.bf16.msra.mxu3 %v652_v44  ;;  %v599_v7 = vld [vmem:[%s965_s10 + $0x28] sm:$0xf]  ;;  %v711_v8 = vld [vmem:[%s965_s10 + $0x34] sm:$0xf0]  ;;  %v709_v9 = vld [vmem:[%s965_s10 + $0x2c] sm:$0xf]  ;;  %v624_v11 = vor.u32 %v718_v1, %v623_v0  ;;  %v596_v14 = vor.u32 %v708_v5, %v593_v6 }
  0x2e   : > { %412 = vmatpush.bf16.msra.mxu0 %v656_v51  ;;  %v601_v10 = vld [vmem:[%s965_s10 + $0x38] sm:$0xf0]  ;;  %v607_v12 = vld [vmem:[%s965_s10 + $0x40] sm:$0xf]  ;;  %v714_v13 = vld [vmem:[%s965_s10 + $0x4c] sm:$0xf0]  ;;  %v600_v15 = vor.u32 %v711_v8, %v599_v7 }
  0x2f   : > { %v604_v16 = vor.u32 %v709_v9, %v601_v10  ;;  %v704_v17 = vld [vmem:[%s965_s10 + $0x4] sm:$0xf]  ;;  %v577_v18 = vld [vmem:[%s965_s10 + $0x10] sm:$0xf0]  ;;  %v583_v19 = vld [vmem:[%s965_s10 + $0x8] sm:$0xf]  ;;  %v608_v23 = vor.u32 %v714_v13, %v607_v12 }
  0x30   : > { %427 = vmatpush.bf16.msra.mxu1 %v628_v54  ;;  %v707_v20 = vld [vmem:[%s965_s10 + $0x14] sm:$0xf0]  ;;  %v705_v21 = vld [vmem:[%s965_s10 + $0xc] sm:$0xf]  ;;  %v585_v22 = vld [vmem:[%s965_s10 + $0x18] sm:$0xf0]  ;;  %v580_v26 = vor.u32 %v704_v17, %v577_v18 }
  0x31   : > { %440 = vmatpush.bf16.msra.mxu2 %v632_v55  ;;  %453 = vmatpush.bf16.msra.mxu3 %v636_v56  ;;  %v591_v24 = vld [vmem:[%s965_s10 + $0x20] sm:$0xf]  ;;  %v710_v25 = vld [vmem:[%s965_s10 + $0x2c] sm:$0xf0]  ;;  %v584_v28 = vor.u32 %v707_v20, %v583_v19  ;;  %v588_v29 = vor.u32 %v705_v21, %v585_v22 }
  0x32   : > { %413 = vmatpush.bf16.msra.mxu0 %v640_v63  ;;  %v201_v27 = vld [vmem:[%s960_s8] sm:$0xff]  ;;  %v592_v30 = vor.u32 %v710_v25, %v591_v24  ;;  %v706_v33 = vld [vmem:[%s965_s10 + $0xc] sm:$0xf0] }
  0x33   : > { %v240_v31 = vpack.c.bf16 %v201_v27, %v201_v27  ;;  %v575_v32 = vld [vmem:[%s965_s10] sm:$0xf] }
  0x34   : > { %428 = vmatpush.bf16.msra.mxu1 %v612_v2  ;;  %v576_v34 = vor.u32 %v706_v33, %v575_v32  ;;  %v239_v35 = vld [vmem:[%s238_s20] sm:$0xf] }
  0x35   : > { %441 = vmatpush.bf16.msra.mxu2 %v616_v3  ;;  %454 = vmatpush.bf16.msra.mxu3 %v620_v4  ;;  %v243_v36 = vperm.slane %v239_v35, 1  ;;  %v244_v39 = vperm.slane %v239_v35, 2  ;;  %v245_v40 = vperm.slane %v239_v35, 3  ;;  %v242_v50 = vperm.slane %v239_v35, 0 }
  0x36   : > { %414 = vmatpush.bf16.msra.mxu0 %v624_v11 }
  0x38   : > { %429 = vmatpush.bf16.msra.mxu1 %v596_v14 }
  0x39   : > { %442 = vmatpush.bf16.msra.mxu2 %v600_v15  ;;  %455 = vmatpush.bf16.msra.mxu3 %v604_v16 }
  0x3a   : > { %415 = vmatpush.bf16.msra.mxu0 %v608_v23 }
  0x3c   : > { %430 = vmatpush.bf16.msra.mxu1 %v580_v26 }
  0x3d   : > { %443 = vmatpush.bf16.msra.mxu2 %v584_v28  ;;  %456 = vmatpush.bf16.msra.mxu3 %v588_v29 }
  0x3e   : > { %416 = vmatpush.bf16.msra.mxu0 %v592_v30 }
  0x3f   : > { %431 = vmatmul.bf16.vlgmr.msra.gmra.mxu1 %v240_v31 }
  0x40   : > { %444 = vmatmul.bf16.vlgmr.msra.gmra.mxu2 %v240_v31  ;;  %457 = vmatmul.bf16.vlgmr.msra.gmra.mxu3 %v240_v31 }
  0x42   : > { %417 = vmatpush.bf16.msra.mxu0 %v576_v34 }
  0x45   : > { %418 = vmatmul.bf16.vlgmr.msra.gmra.mxu0 %v240_v31 }
  0xbc   : > { %v432_v37 = vpop.f32.mrf.mxu1 }
  0xbd   : > { %v433_v38 = vadd.f32 %v432_v37, %v243_v36 }
  0xbf   : > { %789 = vtanh.f32 %v433_v38 }
  0xc2   : > { %v419_v41 = vpop.f32.mrf.mxu0 }
  0xc3   : > { %v445_v42 = vpop.f32.mrf.mxu2  ;;  %v458_v43 = vpop.f32.mrf.mxu3  ;;  %v420_v57 = vadd.f32 %v419_v41, %v242_v50 }
  0xc4   : > { %v446_v44 = vadd.f32 %v445_v42, %v244_v39  ;;  %v459_v45 = vadd.f32 %v458_v43, %v245_v40  ;;  %v434_v46 = vpop.f32.mrf.mxu1 }
  0xc5   : > { %v790_v47 = vpop.eup %789 }
  0xc6   : > { %v466_v48 = vmul.f32 0.5, %v790_v47  ;;  %791 = vtanh.f32 %v446_v44 }
  0xc7   : > { %793 = vtanh.f32 %v459_v45 }
  0xc8   : > { %v467_v49 = vadd.f32 0.5, %v466_v48 }
  0xca   : > { %v421_v51 = vpop.f32.mrf.mxu0 }
  0xcb   : > { %v447_v52 = vpop.f32.mrf.mxu2  ;;  %v460_v53 = vpop.f32.mrf.mxu3 }
  0xcc   : > { %v792_v54 = vpop.eup %791 }
  0xcd   : > { %v794_v55 = vpop.eup %793  ;;  %v470_v56 = vmul.f32 %v792_v54, %v467_v49 }
  0xce   : > { %v468_v58 = vmul.f32 0.5, %v794_v55 }
  0xcf   : > { %795 = vtanh.f32 %v470_v56 }
  0xd0   : > { %797 = vtanh.f32 %v420_v57  ;;  %v469_v59 = vadd.f32 0.5, %v468_v58 }
  0xd5   : > { %v796_v60 = vpop.eup %795 }
  0xd6   : > { %v472_v61 = vmul.f32 %v796_v60, %v469_v59  ;;  %v798_v62 = vpop.eup %797 }
  0xd8   : > { %v474_v63 = vsub.f32 %v472_v61, %v201_v27  ;;  %v473_v0 = vadd.f32 %v472_v61, %v201_v27 }
  0xda   : > { %v475_v1 = vmul.f32 %v798_v62, %v474_v63 }
  0xdc   : > { %v476_v2 = vadd.f32 %v475_v1, %v473_v0 }
  0xde   : > { %v477_v3 = vmul.f32 0.5, %v476_v2 }
  0xe0   : > { %478 = vst [vmem:[%s960_s8] sm:$0xff] %v477_v3 }
  0xe1 PF: > { %s14_s16 = sadd.s32 1, %s871_s16   ;;  %s1058_s12 = smov %s863_s14 }
  0xe2   : > { %p11_p10 = scmp.ge.s32.totalorder %s14_s16, 6   ;;  %s1059_s13 = smov %s867_s15 }
  0xe3   : > { %s1060_s14 = smov %s1063_s18  ;;  %s1061_s15 = smov %s1067_s19 }
  0xe4   :  { %13 = sbr.rel (!%p11_p10) target bundleno = 3 (0x3), region = 73 }
  0xe9   :  { %498 = vsyncpa [#allocation3], 1 }
  0xea   :  { %500 = vsyncpa [#allocation3 + $0x1], 1 }

</bundles_post_ra>
